<compile_context>
chip_gen: v5e
topology: v5e:2x2
jax: 0.10.0
libtpu: 0.0.40
codegen_flags: <defaults>
</compile_context>

<pallas_src>
import functools

import jax
import jax.numpy as jnp
from jax.experimental import pallas as pl
from jax.experimental.pallas import tpu as pltpu

_MASKED_CODE = -2      # mask == True  -> masked_fill(-inf)
_NO_TF_CODE = -1       # tf < 0        -> no tf feature
_NEG_INF = -1e30       # finite stand-in for -inf (keeps fully-masked rows NaN-free)
_MIB = 1024 * 1024


def _cdiv(a, b):
    return -(-a // b)


# ---------------------------------------------------------------------------
# Fused scaled-dot-product-attention kernel
# ---------------------------------------------------------------------------
def _sdpa_kernel(tab_ref, q_ref, k_ref, v_ref, code_ref, out_ref, *opt_attn_ref,
                 inv_temperature, vocab, mm_precision):
    """One grid step: bt batches x tq queries x all Lk keys, for head h."""
    h = pl.program_id(2)

    # scores = (q / temperature) @ k^T : contract the LAST dim of both operands
    # so the MXU is fed directly (no XLU transpose of k).  Scaling q touches
    # only tq*dk elements instead of the tq*lk score block.
    q = q_ref[...] * jnp.asarray(inv_temperature, dtype=q_ref.dtype)
    scores = jax.lax.dot_general(
        q, k_ref[...],
        dimension_numbers=(((2,), (2,)), ((0,), (0,))),
        preferred_element_type=jnp.float32,
        precision=mm_precision)                              # (bt, tq, lk) f32

    # Per-head additive tf-feature bias + mask, built in-kernel from the
    # compact head-invariant int8 code block (no per-head f32 HBM stream).
    # Small-vocab "gather": unrolled compare/select against scalars read from
    # the SMEM-resident embedding table (flattened as [head * vocab + label]).
    c = code_ref[...].astype(jnp.int32)                      # (bt, tq, lk)
    bias = jnp.zeros(scores.shape, jnp.float32)
    base = h * vocab
    for v_id in range(vocab):                                # static unroll (small vocab)
        bias = jnp.where(c == v_id, tab_ref[base + v_id] * inv_temperature, bias)
    s = scores + bias
    s = jnp.where(c == _MASKED_CODE, _NEG_INF, s)            # masked_fill(mask, -inf)

    # Softmax over keys in f32.  Exact normalization: the reciprocal only acts
    # on the (bt, tq, 1) slab, so it is cheap AND keeps attn rows summing to 1.
    m = jnp.max(s, axis=-1, keepdims=True)
    e = jnp.exp(s - m)
    denom = jnp.sum(e, axis=-1, keepdims=True)
    attn = e * (1.0 / denom)

    if opt_attn_ref:                                         # optional attn writeback
        opt_attn_ref[0][...] = attn.astype(opt_attn_ref[0].dtype)

    out = jax.lax.dot_general(
        attn.astype(v_ref.dtype), v_ref[...],
        dimension_numbers=(((2,), (1,)), ((0,), (0,))),
        preferred_element_type=jnp.float32,
        precision=mm_precision)                              # (bt, tq, dv)
    out_ref[...] = out.astype(out_ref.dtype)

    # TODO(synk): nn.Dropout(attn_dropout) omitted (eval-mode identity); a
    # training-mode version would use pltpu.prng_seed / prng_random_bits.


def _vmem_capacity_bytes():
    try:
        return int(pltpu.get_tpu_info().vmem_capacity_bytes)
    except Exception:
        return 64 * _MIB          # conservative fallback (v7x-sized VMEM)


def _fused_sdpa(qh, kh, vh, code, tf_embedding, *, inv_temperature,
                return_attn=True, attn_dtype=None):
    """qh/kh/vh: (n_head, B, L, d).  code: (B, Lq, Lk) int8.  tf_embedding: (vocab, n_head)."""
    n_head, sz_b, lq, dk = qh.shape
    lk = kh.shape[2]
    dv = vh.shape[3]
    vocab = int(tf_embedding.shape[0])

    in_dt = jnp.dtype(qh.dtype)
    out_dt = in_dt
    attn_dt = jnp.dtype(attn_dtype) if attn_dtype is not None else in_dt
    in_it, out_it, attn_it = in_dt.itemsize, out_dt.itemsize, attn_dt.itemsize

    # ---- per-generation VMEM budgeting (v5e/v6e: 128 MiB, v7x: 64 MiB) -----
    cap = _vmem_capacity_bytes()
    big_vmem = cap >= 100 * _MIB
    vmem_limit = 96 * _MIB if big_vmem else 48 * _MIB      # explicit scoped limit
    step_budget = 72 * _MIB if big_vmem else 36 * _MIB     # per-step resident target
    row_cap = 2048 if big_vmem else 1024                   # bt*tq rows per step

    def step_bytes(bt, tq):
        # double-buffered q/k/v + int8 code + outputs, plus ~4 live f32 copies
        # of the (bt,tq,lk) score-sized intermediates and the f32 out accum.
        dbuf_in = 2 * bt * (in_it * (tq * dk + lk * dk + lk * dv) + tq * lk)
        dbuf_out = 2 * bt * (out_it * tq * dv
                             + (attn_it * tq * lk if return_attn else 0))
        interm = bt * (4 * 4 * tq * lk + 2 * 4 * tq * dv)
        return dbuf_in + dbuf_out + interm

    # ---- query tile ---------------------------------------------------------
    # TODO(synk): for very long Lk an Lk grid axis + online softmax would keep
    # VMEM independent of sequence length, but it conflicts with materializing
    # the normalized attn output the module returns.
    cands = ([lq] if lq <= 256 else [256]) + \
        [t for t in (128, 64, 32, 16, 8) if t < min(lq, 256)]
    tq = cands[-1]
    for t in cands:
        if step_bytes(1, t) <= step_budget:
            tq = t
            break
    lq_pad = _cdiv(lq, tq) * tq

    # ---- batch rows packed per step (pad instead of divisor hunting) -------
    bt = max(1, min(step_budget // step_bytes(1, tq), row_cap // tq, sz_b))
    if n_head * (lq_pad // tq) * _cdiv(sz_b, bt) < 2 and sz_b > 1:
        bt = _cdiv(sz_b, 2)            # guarantee >=2 grid steps (v7x has 2 TCs)
    sz_b_pad = _cdiv(sz_b, bt) * bt

    if sz_b_pad != sz_b or lq_pad != lq:
        pb, pq = sz_b_pad - sz_b, lq_pad - lq
        qh = jnp.pad(qh, ((0, 0), (0, pb), (0, pq), (0, 0)))
        kh = jnp.pad(kh, ((0, 0), (0, pb), (0, 0), (0, 0)))
        vh = jnp.pad(vh, ((0, 0), (0, pb), (0, 0), (0, 0)))
        code = jnp.pad(code, ((0, pb), (0, pq), (0, 0)))   # int8: cheap vs old f32 bias

    grid = (sz_b_pad // bt, lq_pad // tq, n_head)          # head innermost -> code
                                                           # block resident across heads

    # tf embedding table, flattened as [head * vocab + label], lives in SMEM.
    tab_flat = jnp.transpose(tf_embedding.astype(jnp.float32)).reshape(-1)

    in_specs = [
        pl.BlockSpec(memory_space=pltpu.MemorySpace.SMEM),                   # tf table
        pl.BlockSpec((None, bt, tq, dk), lambda b, qi, h: (h, b, qi, 0)),    # q
        pl.BlockSpec((None, bt, lk, dk), lambda b, qi, h: (h, b, 0, 0)),     # k
        pl.BlockSpec((None, bt, lk, dv), lambda b, qi, h: (h, b, 0, 0)),     # v
        pl.BlockSpec((bt, tq, lk), lambda b, qi, h: (b, qi, 0)),             # code (head-invariant)
    ]
    out_shapes = [jax.ShapeDtypeStruct((n_head, sz_b_pad, lq_pad, dv), out_dt)]
    out_specs = [pl.BlockSpec((None, bt, tq, dv), lambda b, qi, h: (h, b, qi, 0))]
    if return_attn:
        out_shapes.append(jax.ShapeDtypeStruct((n_head, sz_b_pad, lq_pad, lk), attn_dt))
        out_specs.append(pl.BlockSpec((None, bt, tq, lk), lambda b, qi, h: (h, b, qi, 0)))

    # f32 inputs: HIGHEST so the kernel tracks an f32 reference; bf16 inputs
    # keep the native full-rate bf16 MXU path (f32 accumulation either way).
    mm_prec = (jax.lax.Precision.HIGHEST if in_dt == jnp.float32
               else jax.lax.Precision.DEFAULT)
    kernel = functools.partial(_sdpa_kernel,
                               inv_temperature=float(inv_temperature),
                               vocab=vocab,
                               mm_precision=mm_prec)

    res = pl.pallas_call(
        kernel,
        out_shape=tuple(out_shapes),
        grid=grid,
        in_specs=in_specs,
        out_specs=tuple(out_specs),
        compiler_params=pltpu.CompilerParams(
            dimension_semantics=("parallel", "parallel", "parallel"),
            vmem_limit_bytes=vmem_limit),
    )(tab_flat, qh, kh, vh, code)

    out4 = res[0][:, :sz_b, :lq, :]
    attn4 = res[1][:, :sz_b, :lq, :] if return_attn else None
    return out4, attn4


# ---------------------------------------------------------------------------
# MultiHeadAttention forward (projections / embedding / LayerNorm in XLA)
# ---------------------------------------------------------------------------
def _layer_norm(x, gamma, beta, eps=1e-5):
    mu = jnp.mean(x, axis=-1, keepdims=True)
    var = jnp.mean((x - mu) ** 2, axis=-1, keepdims=True)
    return (x - mu) * jax.lax.rsqrt(var + eps) * gamma + beta


def multi_head_attention_forward(params, q, k, v, mask, tf, *, n_head, d_k, d_v,
                                 return_attn=True, attn_dtype=None):
    sz_b, len_q, _ = q.shape
    _, len_k, _ = k.shape
    # NOTE: like the PyTorch module, the tf-feature path assumes len_k == len_q.
    residual = q

    def proj(x, w, b, d, length):
        y = x @ w.T + b
        y = y.reshape(sz_b, length, n_head, d)
        return jnp.transpose(y, (2, 0, 1, 3))                # (n_head, B, L, d)

    qh = proj(q, params["w_qs"], params["b_qs"], d_k, len_q)
    kh = proj(k, params["w_ks"], params["b_ks"], d_k, len_k)
    vh = proj(v, params["w_vs"], params["b_vs"], d_v, len_k)

    # Compact, head-invariant int8 code stream (mask + tf folded):
    #   -2 = masked, -1 = no tf feature, >=0 = tf label id.
    # TODO(synk): for a large tf-label vocab (>~32) the in-kernel select chain
    # should fall back to a precomputed bf16 bias.
    tf_i = tf.astype(jnp.int32)
    code = jnp.where(tf_i >= 0, tf_i, _NO_TF_CODE)
    code = jnp.where(mask.astype(bool), _MASKED_CODE, code).astype(jnp.int8)

    inv_temp = 1.0 / (float(d_k) ** 0.5)
    out4, attn4 = _fused_sdpa(qh, kh, vh, code, params["tf_embedding"],
                              inv_temperature=inv_temp,
                              return_attn=return_attn, attn_dtype=attn_dtype)

    out = jnp.transpose(out4, (1, 2, 0, 3)).reshape(sz_b, len_q, n_head * d_v)
    out = out @ params["w_fc"].T + params["b_fc"]
    # TODO(synk): nn.Dropout(dropout) on the fc output omitted (eval identity).
    out = _layer_norm(out + residual, params["ln_gamma"], params["ln_beta"])
    attn = attn4.reshape(n_head * sz_b, len_q, len_k) if return_attn else None
    return out, attn


# ---------------------------------------------------------------------------
# Pure-JAX reference mirroring the PyTorch module
# ---------------------------------------------------------------------------
def _reference_mha(params, q, k, v, mask, tf, *, n_head, d_k, d_v):
    sz_b, len_q, _ = q.shape
    _, len_k, _ = k.shape
    residual = q

    def proj(x, w, b, d, length):
        y = x @ w.T + b
        y = y.reshape(sz_b, length, n_head, d)
        return jnp.transpose(y, (2, 0, 1, 3)).reshape(n_head * sz_b, length, d)

    qh = proj(q, params["w_qs"], params["b_qs"], d_k, len_q)
    kh = proj(k, params["w_ks"], params["b_ks"], d_k, len_k)
    vh = proj(v, params["w_vs"], params["b_vs"], d_v, len_k)

    tf_mask = tf >= 0
    idx = jnp.where(tf_mask, tf, 0).astype(jnp.int32)
    tf_emb = params["tf_embedding"][idx] * tf_mask[..., None].astype(jnp.float32)
    tf_features = jnp.transpose(tf_emb, (3, 0, 1, 2)).reshape(
        n_head * sz_b, len_q, len_q)
    mask_h = jnp.tile(mask, (n_head, 1, 1))

    temperature = float(d_k) ** 0.5
    scores = jnp.einsum("bqd,bkd->bqk", qh, kh,
                        precision=jax.lax.Precision.HIGHEST)
    scores = (scores + tf_features) / temperature
    scores = jnp.where(mask_h, -jnp.inf, scores)
    attn = jax.nn.softmax(scores, axis=-1)
    out_h = jnp.einsum("bqk,bkd->bqd", attn, vh,
                       precision=jax.lax.Precision.HIGHEST)

    out = jnp.transpose(out_h.reshape(n_head, sz_b, len_q, d_v),
                        (1, 2, 0, 3)).reshape(sz_b, len_q, n_head * d_v)
    out = out @ params["w_fc"].T + params["b_fc"]
    out = _layer_norm(out + residual, params["ln_gamma"], params["ln_beta"])
    return out, attn


if __name__ == "__main__":
    sz_b, len_q = 2, 8
    d_model, n_head, d_k, d_v = 32, 4, 16, 16
    vocab = 7

    key = jax.random.PRNGKey(0)
    ks = jax.random.split(key, 12)

    params = {
        "w_qs": jax.random.normal(ks[0], (n_head * d_k, d_model)) * (2.0 / (d_model + d_k)) ** 0.5,
        "b_qs": jax.random.normal(ks[1], (n_head * d_k,)) * 0.02,
        "w_ks": jax.random.normal(ks[2], (n_head * d_k, d_model)) * (2.0 / (d_model + d_k)) ** 0.5,
        "b_ks": jax.random.normal(ks[3], (n_head * d_k,)) * 0.02,
        "w_vs": jax.random.normal(ks[4], (n_head * d_v, d_model)) * (2.0 / (d_model + d_v)) ** 0.5,
        "b_vs": jax.random.normal(ks[5], (n_head * d_v,)) * 0.02,
        "tf_embedding": jax.random.normal(ks[6], (vocab, n_head)) * 0.1,
        "w_fc": jax.random.normal(ks[7], (d_model, n_head * d_v)) * (2.0 / (d_model + n_head * d_v)) ** 0.5,
        "b_fc": jax.random.normal(ks[8], (d_model,)) * 0.02,
        "ln_gamma": jnp.ones((d_model,), jnp.float32),
        "ln_beta": jnp.zeros((d_model,), jnp.float32),
    }

    q_in = jax.random.normal(ks[9], (sz_b, len_q, d_model), dtype=jnp.float32)
    k_in = q_in  # self-attention style inputs (module assumes len_k == len_q for tf)
    v_in = q_in
    mask = jax.random.bernoulli(ks[10], p=0.2, shape=(sz_b, len_q, len_q))
    mask = mask.at[:, :, 0].set(False)  # never mask a full row
    tf = jax.random.randint(ks[11], (sz_b, len_q, len_q), minval=-1, maxval=vocab)

    out, attn = multi_head_attention_forward(
        params, q_in, k_in, v_in, mask, tf,
        n_head=n_head, d_k=d_k, d_v=d_v, return_attn=True)
    jax.block_until_ready((out, attn))

    out_ref, attn_ref = _reference_mha(
        params, q_in, k_in, v_in, mask, tf, n_head=n_head, d_k=d_k, d_v=d_v)

    assert out.shape == out_ref.shape and attn.shape == attn_ref.shape
    assert jnp.allclose(out, out_ref, atol=2e-3, rtol=2e-3), "output mismatch"
    assert jnp.allclose(attn, attn_ref, atol=2e-3, rtol=2e-3), "attn mismatch"

    print("KERNEL_OK")
</pallas_src>

<mosaic_0001>
module attributes {stable_mosaic.version = 11 : i64} {
  func.func @_sdpa_kernel(%arg0: i32, %arg1: i32, %arg2: i32, %arg3: memref<28xf32, #tpu.memory_space<smem>>, %arg4: memref<1x2x8x16xf32, #tpu.memory_space<vmem>>, %arg5: memref<1x2x8x16xf32, #tpu.memory_space<vmem>>, %arg6: memref<1x2x8x16xf32, #tpu.memory_space<vmem>>, %arg7: memref<2x8x8xi8, #tpu.memory_space<vmem>>, %arg8: memref<1x2x8x16xf32, #tpu.memory_space<vmem>>, %arg9: memref<1x2x8x8xf32, #tpu.memory_space<vmem>>) attributes {dimension_semantics = [#tpu.dimension_semantics<parallel>, #tpu.dimension_semantics<parallel>, #tpu.dimension_semantics<parallel>], iteration_bounds = array<i64: 1, 1, 4>, scalar_prefetch = 0 : i64, scratch_operands = 0 : i64, tpu.core_type = #tpu.core_type<tc>, window_params = [{transform_indices = @transform_0, window_bounds = array<i64: 28>}, {transform_indices = @transform_1, window_bounds = array<i64: 1, 2, 8, 16>}, {transform_indices = @transform_2, window_bounds = array<i64: 1, 2, 8, 16>}, {transform_indices = @transform_3, window_bounds = array<i64: 1, 2, 8, 16>}, {transform_indices = @transform_4, window_bounds = array<i64: 2, 8, 8>}, {transform_indices = @transform_5, window_bounds = array<i64: 1, 2, 8, 16>}, {transform_indices = @transform_6, window_bounds = array<i64: 1, 2, 8, 8>}]} {
    %c0 = arith.constant 0 : index
    %c0_0 = arith.constant 0 : index
    %c0_1 = arith.constant 0 : index
    %c0_2 = arith.constant 0 : index
    %0 = vector.load %arg4[%c0, %c0_0, %c0_1, %c0_2] : memref<1x2x8x16xf32, #tpu.memory_space<vmem>>, vector<1x2x8x16xf32>
    %1 = vector.shape_cast %0 : vector<1x2x8x16xf32> to vector<2x8x16xf32>
    %cst = arith.constant 2.500000e-01 : f32
    %2 = vector.broadcast %cst : f32 to vector<2x8x16xf32>
    %3 = arith.mulf %1, %2 : vector<2x8x16xf32>
    %c0_3 = arith.constant 0 : index
    %c0_4 = arith.constant 0 : index
    %c0_5 = arith.constant 0 : index
    %c0_6 = arith.constant 0 : index
    %4 = vector.load %arg5[%c0_3, %c0_4, %c0_5, %c0_6] : memref<1x2x8x16xf32, #tpu.memory_space<vmem>>, vector<1x2x8x16xf32>
    %5 = vector.shape_cast %4 : vector<1x2x8x16xf32> to vector<2x8x16xf32>
    %cst_7 = arith.constant dense<0.000000e+00> : vector<2x8x8xf32>
    %6 = tpu.matmul %3, %5, %cst_7 {dimension_numbers = #tpu.dot_dimension_numbers<[2], [2], [1], [1], [0, 0, 0, 1, 1, 1], [0], [0]>, precision = #tpu.contract_precision<fp32>} : vector<2x8x16xf32>, vector<2x8x16xf32>, vector<2x8x8xf32> -> vector<2x8x8xf32>
    %c0_8 = arith.constant 0 : index
    %c0_9 = arith.constant 0 : index
    %c0_10 = arith.constant 0 : index
    %7 = vector.load %arg7[%c0_8, %c0_9, %c0_10] : memref<2x8x8xi8, #tpu.memory_space<vmem>>, vector<2x8x8xi8>
    %8 = arith.extsi %7 : vector<2x8x8xi8> to vector<2x8x8xi32>
    %cst_11 = arith.constant 0.000000e+00 : f32
    %9 = vector.broadcast %cst_11 : f32 to vector<2x8x8xf32>
    %c7_i32 = arith.constant 7 : i32
    %10 = arith.muli %arg2, %c7_i32 : i32
    %c0_i32 = arith.constant 0 : i32
    %11 = vector.broadcast %c0_i32 : i32 to vector<2x8x8xi32>
    %12 = arith.cmpi eq, %8, %11 : vector<2x8x8xi32>
    %c0_i32_12 = arith.constant 0 : i32
    %13 = arith.addi %10, %c0_i32_12 : i32
    %14 = arith.index_cast %13 : i32 to index
    %15 = memref.load %arg3[%14] : memref<28xf32, #tpu.memory_space<smem>>
    %cst_13 = arith.constant 2.500000e-01 : f32
    %16 = arith.mulf %15, %cst_13 : f32
    %17 = vector.broadcast %16 : f32 to vector<2x8x8xf32>
    %18 = arith.select %12, %17, %9 : vector<2x8x8xi1>, vector<2x8x8xf32>
    %c1_i32 = arith.constant 1 : i32
    %19 = vector.broadcast %c1_i32 : i32 to vector<2x8x8xi32>
    %20 = arith.cmpi eq, %8, %19 : vector<2x8x8xi32>
    %c1_i32_14 = arith.constant 1 : i32
    %21 = arith.addi %10, %c1_i32_14 : i32
    %22 = arith.index_cast %21 : i32 to index
    %23 = memref.load %arg3[%22] : memref<28xf32, #tpu.memory_space<smem>>
    %cst_15 = arith.constant 2.500000e-01 : f32
    %24 = arith.mulf %23, %cst_15 : f32
    %25 = vector.broadcast %24 : f32 to vector<2x8x8xf32>
    %26 = arith.select %20, %25, %18 : vector<2x8x8xi1>, vector<2x8x8xf32>
    %c2_i32 = arith.constant 2 : i32
    %27 = vector.broadcast %c2_i32 : i32 to vector<2x8x8xi32>
    %28 = arith.cmpi eq, %8, %27 : vector<2x8x8xi32>
    %c2_i32_16 = arith.constant 2 : i32
    %29 = arith.addi %10, %c2_i32_16 : i32
    %30 = arith.index_cast %29 : i32 to index
    %31 = memref.load %arg3[%30] : memref<28xf32, #tpu.memory_space<smem>>
    %cst_17 = arith.constant 2.500000e-01 : f32
    %32 = arith.mulf %31, %cst_17 : f32
    %33 = vector.broadcast %32 : f32 to vector<2x8x8xf32>
    %34 = arith.select %28, %33, %26 : vector<2x8x8xi1>, vector<2x8x8xf32>
    %c3_i32 = arith.constant 3 : i32
    %35 = vector.broadcast %c3_i32 : i32 to vector<2x8x8xi32>
    %36 = arith.cmpi eq, %8, %35 : vector<2x8x8xi32>
    %c3_i32_18 = arith.constant 3 : i32
    %37 = arith.addi %10, %c3_i32_18 : i32
    %38 = arith.index_cast %37 : i32 to index
    %39 = memref.load %arg3[%38] : memref<28xf32, #tpu.memory_space<smem>>
    %cst_19 = arith.constant 2.500000e-01 : f32
    %40 = arith.mulf %39, %cst_19 : f32
    %41 = vector.broadcast %40 : f32 to vector<2x8x8xf32>
    %42 = arith.select %36, %41, %34 : vector<2x8x8xi1>, vector<2x8x8xf32>
    %c4_i32 = arith.constant 4 : i32
    %43 = vector.broadcast %c4_i32 : i32 to vector<2x8x8xi32>
    %44 = arith.cmpi eq, %8, %43 : vector<2x8x8xi32>
    %c4_i32_20 = arith.constant 4 : i32
    %45 = arith.addi %10, %c4_i32_20 : i32
    %46 = arith.index_cast %45 : i32 to index
    %47 = memref.load %arg3[%46] : memref<28xf32, #tpu.memory_space<smem>>
    %cst_21 = arith.constant 2.500000e-01 : f32
    %48 = arith.mulf %47, %cst_21 : f32
    %49 = vector.broadcast %48 : f32 to vector<2x8x8xf32>
    %50 = arith.select %44, %49, %42 : vector<2x8x8xi1>, vector<2x8x8xf32>
    %c5_i32 = arith.constant 5 : i32
    %51 = vector.broadcast %c5_i32 : i32 to vector<2x8x8xi32>
    %52 = arith.cmpi eq, %8, %51 : vector<2x8x8xi32>
    %c5_i32_22 = arith.constant 5 : i32
    %53 = arith.addi %10, %c5_i32_22 : i32
    %54 = arith.index_cast %53 : i32 to index
    %55 = memref.load %arg3[%54] : memref<28xf32, #tpu.memory_space<smem>>
    %cst_23 = arith.constant 2.500000e-01 : f32
    %56 = arith.mulf %55, %cst_23 : f32
    %57 = vector.broadcast %56 : f32 to vector<2x8x8xf32>
    %58 = arith.select %52, %57, %50 : vector<2x8x8xi1>, vector<2x8x8xf32>
    %c6_i32 = arith.constant 6 : i32
    %59 = vector.broadcast %c6_i32 : i32 to vector<2x8x8xi32>
    %60 = arith.cmpi eq, %8, %59 : vector<2x8x8xi32>
    %c6_i32_24 = arith.constant 6 : i32
    %61 = arith.addi %10, %c6_i32_24 : i32
    %62 = arith.index_cast %61 : i32 to index
    %63 = memref.load %arg3[%62] : memref<28xf32, #tpu.memory_space<smem>>
    %cst_25 = arith.constant 2.500000e-01 : f32
    %64 = arith.mulf %63, %cst_25 : f32
    %65 = vector.broadcast %64 : f32 to vector<2x8x8xf32>
    %66 = arith.select %60, %65, %58 : vector<2x8x8xi1>, vector<2x8x8xf32>
    %67 = arith.addf %6, %66 : vector<2x8x8xf32>
    %c-2_i32 = arith.constant -2 : i32
    %68 = vector.broadcast %c-2_i32 : i32 to vector<2x8x8xi32>
    %69 = arith.cmpi eq, %8, %68 : vector<2x8x8xi32>
    %cst_26 = arith.constant -1.000000e+30 : f32
    %70 = vector.broadcast %cst_26 : f32 to vector<2x8x8xf32>
    %71 = arith.select %69, %70, %67 : vector<2x8x8xi1>, vector<2x8x8xf32>
    %cst_27 = arith.constant dense<0xFF800000> : vector<2x8xf32>
    %72 = vector.multi_reduction <maximumf>, %71, %cst_27 [2] : vector<2x8x8xf32> to vector<2x8xf32>
    %73 = vector.shape_cast %72 : vector<2x8xf32> to vector<2x8x1xf32>
    %74 = vector.broadcast %73 : vector<2x8x1xf32> to vector<2x8x8xf32>
    %75 = arith.subf %71, %74 : vector<2x8x8xf32>
    %76 = math.exp %75 : vector<2x8x8xf32>
    %cst_28 = arith.constant dense<0.000000e+00> : vector<2x8xf32>
    %77 = vector.multi_reduction <add>, %76, %cst_28 [2] : vector<2x8x8xf32> to vector<2x8xf32>
    %78 = vector.shape_cast %77 : vector<2x8xf32> to vector<2x8x1xf32>
    %cst_29 = arith.constant 1.000000e+00 : f32
    %79 = vector.broadcast %cst_29 : f32 to vector<2x8x1xf32>
    %80 = arith.divf %79, %78 : vector<2x8x1xf32>
    %81 = vector.broadcast %80 : vector<2x8x1xf32> to vector<2x8x8xf32>
    %82 = arith.mulf %76, %81 : vector<2x8x8xf32>
    %c0_30 = arith.constant 0 : index
    %c0_31 = arith.constant 0 : index
    %c0_32 = arith.constant 0 : index
    %c0_33 = arith.constant 0 : index
    %83 = vector.load %arg9[%c0_30, %c0_31, %c0_32, %c0_33] : memref<1x2x8x8xf32, #tpu.memory_space<vmem>>, vector<1x2x8x8xf32>
    %84 = vector.shape_cast %83 : vector<1x2x8x8xf32> to vector<2x8x8xf32>
    %85 = vector.shape_cast %82 : vector<2x8x8xf32> to vector<1x2x8x8xf32>
    tpu.vector_store %arg9[%c0_30, %c0_31, %c0_32, %c0_33], %85 {strides = array<i32>} : memref<1x2x8x8xf32, #tpu.memory_space<vmem>>, vector<1x2x8x8xf32>,
    %c0_34 = arith.constant 0 : index
    %c0_35 = arith.constant 0 : index
    %c0_36 = arith.constant 0 : index
    %c0_37 = arith.constant 0 : index
    %86 = vector.load %arg6[%c0_34, %c0_35, %c0_36, %c0_37] : memref<1x2x8x16xf32, #tpu.memory_space<vmem>>, vector<1x2x8x16xf32>
    %87 = vector.shape_cast %86 : vector<1x2x8x16xf32> to vector<2x8x16xf32>
    %cst_38 = arith.constant dense<0.000000e+00> : vector<2x8x16xf32>
    %88 = tpu.matmul %82, %87, %cst_38 {dimension_numbers = #tpu.dot_dimension_numbers<[2], [1], [1], [2], [0, 0, 0, 1, 1, 2], [0], [0]>, precision = #tpu.contract_precision<fp32>} : vector<2x8x8xf32>, vector<2x8x16xf32>, vector<2x8x16xf32> -> vector<2x8x16xf32>
    %c0_39 = arith.constant 0 : index
    %c0_40 = arith.constant 0 : index
    %c0_41 = arith.constant 0 : index
    %c0_42 = arith.constant 0 : index
    %89 = vector.load %arg8[%c0_39, %c0_40, %c0_41, %c0_42] : memref<1x2x8x16xf32, #tpu.memory_space<vmem>>, vector<1x2x8x16xf32>
    %90 = vector.shape_cast %89 : vector<1x2x8x16xf32> to vector<2x8x16xf32>
    %91 = vector.shape_cast %88 : vector<2x8x16xf32> to vector<1x2x8x16xf32>
    tpu.vector_store %arg8[%c0_39, %c0_40, %c0_41, %c0_42], %91 {strides = array<i32>} : memref<1x2x8x16xf32, #tpu.memory_space<vmem>>, vector<1x2x8x16xf32>,
    return
  }
  func.func @transform_0(%arg0: i32, %arg1: i32, %arg2: i32) -> i32 {
    %c0_i32 = arith.constant 0 : i32
    %c0_i32_0 = arith.constant 0 : i32
    return %c0_i32 : i32
  }
  func.func @transform_1(%arg0: i32, %arg1: i32, %arg2: i32) -> (i32, i32, i32, i32) {
    %c0_i32 = arith.constant 0 : i32
    %c0_i32_0 = arith.constant 0 : i32
    return %arg2, %arg0, %arg1, %c0_i32 : i32, i32, i32, i32
  }
  func.func @transform_2(%arg0: i32, %arg1: i32, %arg2: i32) -> (i32, i32, i32, i32) {
    %c0_i32 = arith.constant 0 : i32
    %c0_i32_0 = arith.constant 0 : i32
    %c0_i32_1 = arith.constant 0 : i32
    return %arg2, %arg0, %c0_i32, %c0_i32_0 : i32, i32, i32, i32
  }
  func.func @transform_3(%arg0: i32, %arg1: i32, %arg2: i32) -> (i32, i32, i32, i32) {
    %c0_i32 = arith.constant 0 : i32
    %c0_i32_0 = arith.constant 0 : i32
    %c0_i32_1 = arith.constant 0 : i32
    return %arg2, %arg0, %c0_i32, %c0_i32_0 : i32, i32, i32, i32
  }
  func.func @transform_4(%arg0: i32, %arg1: i32, %arg2: i32) -> (i32, i32, i32) {
    %c0_i32 = arith.constant 0 : i32
    %c0_i32_0 = arith.constant 0 : i32
    return %arg0, %arg1, %c0_i32 : i32, i32, i32
  }
  func.func @transform_5(%arg0: i32, %arg1: i32, %arg2: i32) -> (i32, i32, i32, i32) {
    %c0_i32 = arith.constant 0 : i32
    %c0_i32_0 = arith.constant 0 : i32
    return %arg2, %arg0, %arg1, %c0_i32 : i32, i32, i32, i32
  }
  func.func @transform_6(%arg0: i32, %arg1: i32, %arg2: i32) -> (i32, i32, i32, i32) {
    %c0_i32 = arith.constant 0 : i32
    %c0_i32_0 = arith.constant 0 : i32
    return %arg2, %arg0, %arg1, %c0_i32 : i32, i32, i32, i32
  }
}

</mosaic_0001>

<bundles_post_ra>
// kernel: tpu_custom_call.1
= control target key start
LH: loop header
LB: loop body
LE: loop exit
PB: predicated region body
PF: predicated region fallthrough
CT: control target
= control target key end

     0   :  { %s2166_s0 = inlined_call_operand.hbm [shape: f32[28], index: 0, kind: input, shape index: {}]   ;;  %s2167_s1 = inlined_call_operand.hbm [shape: f32[4,2,8,16], index: 1, kind: input, shape index: {}]   ;;  %s2168_s2 = inlined_call_operand.hbm [shape: f32[4,2,8,16], index: 2, kind: input, shape index: {}]   ;;  %s2169_s3 = inlined_call_operand.hbm [shape: f32[4,2,8,16], index: 3, kind: input, shape index: {}]   ;;  %s2170_s4 = inlined_call_operand.hbm [shape: s8[2,8,8], index: 4, kind: input, shape index: {}]   ;;  %s2171_s5 = inlined_call_operand.hbm [shape: f32[4,2,8,16], index: 5, kind: output, shape index: {0}]   ;;  %s2172_s6 = inlined_call_operand.hbm [shape: f32[4,2,8,8], index: 6, kind: output, shape index: {1}]  }
   0x1   :  { %2184 = sst [smem:[#allocation27_spill]] %s2166_s0 }
   0x2   :  { %2185 = sst [smem:[#allocation28_spill]] %s2168_s2 }
   0x3   :  { %2186 = sst [smem:[#allocation29_spill]] %s2170_s4 }
   0x4   :  { %12 = vsyncpa [#allocation5], 0 }
   0x5   :  { %13 = vsyncpa [#allocation3], 0 }
   0x6   :  { %15 = vsyncpa [#allocation3 + $0x1], 0 }
   0x7   :  { %16 = vsyncpa [#allocation8], 0 }
   0x8   :  { %18 = vsyncpa [#allocation8 + $0x1], 0 }
   0x9   :  { %19 = vsyncpa [#allocation11], 0 }
   0xa   :  { %20 = vsyncpa [#allocation4], 0 }
   0xb   :  { %22 = vsyncpa [#allocation4 + $0x1], 0 }
   0xc   :  { %23 = vsyncpa [#allocation14], 0 }
   0xd   :  { %25 = vsyncpa [#allocation14 + $0x1], 0  ;;  %s1890_s21 = smov 0   ;;  %s1892_s22 = smov 0  }
   0xe   :  { %s1894_s23 = smov 0   ;;  %s1896_s24 = smov 0  }
   0xf   :  { %s1898_s25 = smov 0   ;;  %s1900_s26 = smov 0  }
  0x10 LB: > { %2187 = sst [smem:[#allocation21_spill]] %s1825_s21  ;;  %s43_s27 = sadd.s32 1, %s1841_s25  ;;  %s1845_s26 = sphi %s1900_s26, %s31_s26   ;;  %s1841_s25 = sphi %s1898_s25, %s2209_s25   ;;  %s1837_s24 = sphi %s1896_s24, %s2208_s24   ;;  %s1833_s23 = sphi %s1894_s23, %s2212_s23   ;;  %s1829_s22 = sphi %s1892_s22, %s2211_s22   ;;  %s1825_s21 = sphi %s1890_s21, %s2210_s21  }
  0x11   : > { %2188 = sst [smem:[#allocation22_spill]] %s1841_s25  ;;  %s82_s28 = sadd.s32 1, %s1833_s23 }
  0x12   : > { %2189 = sst [smem:[#allocation23_spill]] %s1845_s26  ;;  %p44_p0 = scmp.ge.s32.totalorder %s43_s27, 4 }
  0x13   : > { %p89_p1 = scmp.ne.s32.totalorder %s1833_s23, %s1829_s22  ;;  %p90_p2 = scmp.eq.s32.totalorder %s1845_s26, 0 }
  0x14   : > { %s2214_s27 = smov (%p44_p0, %s43_s27), 0  ;;  %p1516_p4 = scmp.lt.s32.totalorder %s1845_s26, 4 }
  0x15   : > { %2190 = sst [smem:[#allocation24_spill]] %s2214_s27  ;;  %p91_p3 = por %p90_p2, %p89_p1 }
  0x16   : > { %s75_s29 = ssub.s32 %s1841_s25, %s2214_s27  ;;  %s2177_s30 = sand.u32 1, %s1833_s23  }
  0x17   : > { %p80_p5 = scmp.eq.s32.totalorder %s75_s29, 0  ;;  %s1936_s7 = sshll.u32 %s2177_s30, 4 }
  0x18   : > { %s1939_s8 = sshll.u32 %s1841_s25, 4  ;;  %p1941_p6 = pnand %p1516_p4, %p91_p3 }
  0x19   : > { %s1946_s10 = scalar_select %p80_p5, %s1833_s23, %s82_s28  }
  0x1a   : > { %s316_s11 = sand.u32 1, %s1845_s26   ;;  %s2193_s2 = sld [smem:[#allocation28_spill]] }
  0x1b   : > { %2192 = sst [smem:[#allocation25_spill]] %s1946_s10  ;;  %s320_s15 = scalar_lea.vmem [#allocation7], %s1936_s7 }
  0x1c   : > { %s330_s16 = sshll.u32 %s320_s15, 4  ;;  %s1954_s18 = scalar_lea.sflag [#allocation8], %s316_s11  ;;  %s331_s16 = int_to_ptr.vmem [resolvable:$true] %s330_s16 }
  0x1d   : > { %s2173_s19 = smov 128   ;;  %s2175_s20 = smov 8  }
  0x1e   : > { %s1963_s28 = sadd.s32 4294967295, %s1845_s26   ;;  %s1433_s29 = sadd.s32 4294967294, %s1845_s26  }
  0x1f   : > { %p95_p7 = scmp.ne.s32.totalorder %s1829_s22, %s1825_s21  ;;  %p96_p8 = scmp.eq.s32.totalorder %s1963_s28, 0 }
  0x20   : > { %s327_s14 = scalar_lea.hbm %s2193_s2, %s1939_s8  ;;  %p207_p9 = scmp.eq.s32.totalorder %s1963_s28, 3 }
  0x21   : > { %s328_s17 = sshll.u32 %s327_s14, 4  ;;  %p213_p10 = scmp.eq.s32.totalorder %s1433_s29, 3  ;;  %s329_s17 = int_to_ptr.hbm [resolvable:$true] %s328_s17 }
  0x22   : > { %1503 = dma.hbm_to_vmem [thread:$0]  (!%p1941_p6), %s329_s17, 256, %s331_s16, %s1954_s18, %s2173_s19, %s2173_s19, %s2175_s20  }
  0x23   : > { %p1434_p11 = scmp.ge.s32.totalorder %s1845_s26, 1  ;;  %p1973_p12 = por %p96_p8, %p95_p7 }
  0x24   : > { %p1980_p13 = por %p207_p9, %p89_p1  ;;  %p1984_p0 = por %p213_p10, %p95_p7 }
  0x25   : > { %p250_p2 = scmp.lt.s32.totalorder %s1845_s26, 5  ;;  %s2198_s0 = sld [smem:[#allocation27_spill]] }
  0x26   : > { %s2196_s13 = scalar_select %p1984_p0, 1, 0 }
  0x27   : > { %p1992_p3 = pnand %p1434_p11, %p250_p2  ;;  %s2200_s4 = sld [smem:[#allocation29_spill]] }
  0x28   : > { %2197 = sst [smem:[#allocation26_spill]] %s2196_s13  ;;  %s1849_s14 = smov [#allocation10]  }
  0x29   : > { %p1490_p1 = pneg %p1992_p3  ;;  %s277_s15 = sshll.u32 %s1849_s14, 4  ;;  %s278_s15 = int_to_ptr.vmem [resolvable:$true] %s277_s15 }
  0x2a   : > { %s1850_s30 = smov [#allocation2]   ;;  %s1852_s2 = smov 2  }
  0x2b   : > { %s262_s16 = sshll.u32 %s2198_s0, 4  ;;  %p1491_p4 = pnand %p1490_p1, %p96_p8  ;;  %s263_s16 = int_to_ptr.hbm [resolvable:$true] %s262_s16 }
  0x2c   : > { %s1851_s0 = smov 32   ;;  %s295_s25 = scalar_lea.vmem [#allocation6], %s1936_s7 }
  0x2d   : > { %s275_s20 = sshll.u32 %s2200_s4, 4  ;;  %s303_s4 = scalar_lea.hbm %s2167_s1, %s1939_s8  ;;  %s276_s20 = int_to_ptr.hbm [resolvable:$true] %s275_s20 }
  0x2e   : > { %1493 = dma.hbm_to_smem (!%p1491_p4), %s263_s16, 16, %s1850_s30, [#allocation5]  }
  0x2f   : > { %1496 = dma.hbm_to_vmem [thread:$0]  (!%p1491_p4), %s276_s20, 64, %s278_s15, [#allocation11], %s1851_s0, %s1851_s0, %s1852_s2  }
  0x30   : > { %s304_s27 = sshll.u32 %s303_s4, 4  ;;  %s306_s10 = sshll.u32 %s295_s25, 4  ;;  %s305_s27 = int_to_ptr.hbm [resolvable:$true] %s304_s27  ;;  %s307_s10 = int_to_ptr.vmem [resolvable:$true] %s306_s10 }
  0x31   : > { %s2201_s13 = sand.u32 1, %s1833_s23   ;;  %s2202_s21 = smov 8  }
  0x32   : > { %s292_s14 = scalar_lea.sflag [#allocation3], %s2201_s13  ;;  %s2203_s26 = smov 128  }
  0x33   : > { %1500 = dma.hbm_to_vmem [thread:$0]  (!%p1941_p6), %s305_s27, 256, %s307_s10, %s292_s14, %s2203_s26, %s2203_s26, %s2202_s21  }
  0x34   : > { %s351_s0 = scalar_lea.hbm %s2169_s3, %s1939_s8  ;;  %s344_s20 = scalar_lea.vmem [#allocation9], %s1936_s7 }
  0x35   : > { %s352_s2 = sshll.u32 %s351_s0, 4  ;;  %s354_s15 = sshll.u32 %s344_s20, 4  ;;  %s353_s2 = int_to_ptr.hbm [resolvable:$true] %s352_s2  ;;  %s355_s15 = int_to_ptr.vmem [resolvable:$true] %s354_s15 }
  0x36   : > { %1506 = dma.hbm_to_vmem [thread:$0]  (!%p1941_p6), %s353_s2, 256, %s355_s15, %s1954_s18, %s2203_s26, %s2203_s26, %s2202_s21  }
  0x37   : > { %366 = sbr.rel (%p1992_p3) target bundleno = 660 (0x294), region = 40 }
  0x3c   : > { %1800 = dma.done.wait (%p96_p8), [#allocation5], 16  }
  0x3d   : > { %1802 = vsyncadd (%p96_p8), [#allocation5], 4294967280  ;;  %s2033_s4 = sand.u32 1, %s1829_s22  }
  0x3e   : > { %s2036_s25 = sshll.u32 %s2033_s4, 4  ;;  %s374_s27 = scalar_lea.sflag [#allocation3], %s2033_s4 }
  0x3f   : > { %s377_s21 = scalar_lea.vmem [#allocation6], %s2036_s25 }
  0x40   : > { %1804 = dma.done.wait (%p1973_p12), %s374_s27, 256  }
  0x41   : > { %1806 = vsyncadd (%p1973_p12), %s374_s27, 4294967040  ;;  %s383_s26 = sand.u32 1, %s1963_s28   ;;  %s387_s8 = scalar_lea.vmem [#allocation7], %s2036_s25 }
  0x42   : > { %s384_s7 = scalar_lea.sflag [#allocation8], %s383_s26 }
  0x43   : > { %1808 = dma.done.wait (%p1973_p12), %s384_s7, 512  }
  0x44   : > { %1810 = vsyncadd (%p1973_p12), %s384_s7, 4294966784  ;;  %s397_s9 = scalar_lea.vmem [#allocation9], %s2036_s25 }
  0x45   : > { %1812 = dma.done.wait (%p96_p8), [#allocation11], 64  }
  0x46   : > { %1814 = vsyncadd (%p96_p8), [#allocation11], 4294967232 }
  0x47   : > { %408 = sfence }
  0x48   : > { %v458_v0 = vld [vmem:[%s387_s8] sm:$0xff]  ;;  %vm520_vm0 = vcmask 130048   ;;  %v459_v2 = vld [vmem:[%s387_s8 + $0x8] sm:$0xff]  ;;  %s464_s10 = smul.u32 7, %s1837_s24 }
  0x49   : > { %v454_v1 = vld [vmem:[%s377_s21] sm:$0xff]  ;;  %v525_v3 = vsel %vm520_vm0, %v458_v0, 0  ;;  %v677_v5 = vsel %vm520_vm0, %v459_v2, 0  ;;  %v455_v6 = vld [vmem:[%s377_s21 + $0x8] sm:$0xff] }
  0x4a   : > { %v456_v4 = vmul.f32 0.25, %v454_v1  ;;  %v542_v7 = vand.u32 4294901760, %v525_v3  ;;  %v694_v8 = vand.u32 4294901760, %v677_v5  ;;  %v457_v9 = vmul.f32 0.25, %v455_v6  ;;  %s467_s18 = sld [smem:[#allocation2 + %s464_s10]]  ;;  %s474_s28 = sadd.s32 1, %s464_s10 }
  0x4b   : > { %s475_s11 = sld [smem:[#allocation2 + %s474_s28]]  ;;  %s482_s13 = sadd.s32 2, %s464_s10  ;;  %v1469_v30 = vld [vmem:[#allocation10] sm:$0xf]  }
  0x4c   : > { %v522_v10 = vsel %vm520_vm0, %v456_v4, 0  ;;  %v569_v11 = vsub.f32 %v525_v3, %v542_v7  ;;  %543 = vmatpush.xpose.msra.mxu0 %v542_v7  ;;  %619 = vmatpush.xpose.msra.mxu3 %v542_v7  ;;  %v721_v13 = vsub.f32 %v677_v5, %v694_v8  ;;  %v674_v14 = vsel %vm520_vm0, %v457_v9, 0  ;;  %s483_s17 = sld [smem:[#allocation2 + %s482_s13]]  ;;  %s490_s19 = sadd.s32 3, %s464_s10 }
  0x4d   : > { %v544_v12 = vand.u32 4294901760, %v522_v10  ;;  %v696_v15 = vand.u32 4294901760, %v674_v14  ;;  %v2060_v31 = vunpack.c.0.s8 %v1469_v30  ;;  %s491_s14 = sld [smem:[#allocation2 + %s490_s19]]  ;;  %s498_s30 = sadd.s32 4, %s464_s10  ;;  %v2064_v35 = vunpack.c.1.s8 %v1469_v30 }
  0x4e   : > { %596 = vmatpush.xpose.msra.mxu2 %v569_v11  ;;  %v570_v17 = vand.u32 4294901760, %v569_v11  ;;  %v722_v18 = vand.u32 4294901760, %v721_v13  ;;  %s499_s0 = sld [smem:[#allocation2 + %s498_s30]]  ;;  %s506_s2 = sadd.s32 5, %s464_s10 }
  0x4f   : > { %v545_v16 = vsub.f32 %v522_v10, %v544_v12  ;;  %v697_v19 = vsub.f32 %v674_v14, %v696_v15  ;;  %vm465_vm1 = vcmp.eq.s32.totalorder %v2060_v31, 0  ;;  %vm472_vm2 = vcmp.eq.s32.totalorder %v2060_v31, 1  ;;  %s507_s15 = sld [smem:[#allocation2 + %s506_s2]]  ;;  %s514_s27 = sadd.s32 6, %s464_s10 }
  0x50   : > { %v571_v20 = vsub.f32 %v569_v11, %v570_v17  ;;  %645 = vmatpush.xpose.msrb.mxu0 %v570_v17  ;;  %v723_v22 = vsub.f32 %v721_v13, %v722_v18  ;;  %s468_s29 = smul.f32 0.25, %s467_s18  ;;  %vm480_vm3 = vcmp.eq.s32.totalorder %v2060_v31, 2  ;;  %s515_s26 = sld [smem:[#allocation2 + %s514_s27]]  ;;  %vm488_vm4 = vcmp.eq.s32.totalorder %v2060_v31, 3 }
  0x51   : > { %v546_v21 = vand.u32 4294901760, %v545_v16  ;;  %599 = vmatmul.f32.vlgmr.msra.gmra.mxu2 %v545_v16  ;;  %v698_v23 = vand.u32 4294901760, %v697_v19  ;;  %s476_s16 = smul.f32 0.25, %s475_s11  ;;  %vm466_vm5 = vcmp.eq.s32.totalorder %v2064_v35, 0  ;;  %vm496_vm6 = vcmp.eq.s32.totalorder %v2060_v31, 4  ;;  %s1466_s18 = sshll.u32 %s1837_s24, 4 }
  0x52   : > { %695 = vmatpush.xpose.msrb.mxu2 %v694_v8  ;;  %v572_v24 = vand.u32 4294901760, %v571_v20  ;;  %v724_v26 = vand.u32 4294901760, %v723_v22  ;;  %v469_v32 = vstv %s468_s29  ;;  %s484_s20 = smul.f32 0.25, %s483_s17  ;;  %vm473_vm7 = vcmp.eq.s32.totalorder %v2064_v35, 1  ;;  %s1224_s13 = scalar_lea.hbm %s2172_s6, %s1466_s18 }
  0x53   : > { %v547_v25 = vsub.f32 %v545_v16, %v546_v21  ;;  %623 = vmatmul.f32.vlgmr.msra.gmra.mxu3 %v546_v21  ;;  %v699_v27 = vsub.f32 %v697_v19, %v698_v23  ;;  %v470_v33 = vsel %vm465_vm1, %v469_v32, 0.0  ;;  %v477_v34 = vstv %s476_s16  ;;  %s492_s21 = smul.f32 0.25, %s491_s14  ;;  %s1227_s19 = sshll.u32 %s1224_s13, 4  ;;  %s1228_s19 = int_to_ptr.hbm [resolvable:$true] %s1227_s19 }
  0x54   : > { %573 = vmatpush.xpose.msra.mxu1 %v572_v24  ;;  %725 = vmatpush.xpose.msrb.mxu3 %v724_v26  ;;  %v478_v36 = vsel %vm472_vm2, %v477_v34, %v470_v33  ;;  %v485_v37 = vstv %s484_s20  ;;  %s500_s7 = smul.f32 0.25, %s499_s0  ;;  %v471_v42 = vsel %vm466_vm5, %v469_v32, 0.0  ;;  %vm504_vm8 = vcmp.eq.s32.totalorder %v2060_v31, 5  ;;  %s1190_s29 = scalar_lea.sflag [#allocation14], %s2033_s4 }
  0x55   : > { %v548_v28 = vand.u32 4294901760, %v547_v25  ;;  %v700_v29 = vand.u32 4294901760, %v699_v27  ;;  %v486_v38 = vsel %vm480_vm3, %v485_v37, %v478_v36  ;;  %v493_v39 = vstv %s492_s21  ;;  %s508_s8 = smul.f32 0.25, %s507_s15  ;;  %s1733_s14 = sshra.s32 %s1228_s19, 4  ;;  %s1734_s14 = int_to_ptr.hbm [resolvable:$true] %s1733_s14 }
  0x56   : > { %797 = vmatpush.xpose.msra.mxu2 %v722_v18  ;;  %v494_v40 = vsel %vm488_vm4, %v493_v39, %v486_v38  ;;  %v501_v41 = vstv %s500_s7  ;;  %s516_s10 = smul.f32 0.25, %s515_s26  ;;  %v479_v45 = vsel %vm473_vm7, %v477_v34, %v471_v42  ;;  %vm481_vm9 = vcmp.eq.s32.totalorder %v2064_v35, 2  ;;  %v883_v34 = vld [vmem:[%s397_s9 + $0x8] sm:$0xff]  ;;  %s1735_s30 = scalar_lea.hbm %s1734_s14, 16 }
  0x57   : > { %549 = vmatmul.f32.vlgmr.msra.gmra.mxu0 %v548_v28  ;;  %575 = vmatmul.f32.vlgmr.msra.gmra.mxu1 %v544_v12  ;;  %v502_v43 = vsel %vm496_vm6, %v501_v41, %v494_v40  ;;  %v509_v44 = vstv %s508_s8  ;;  %vm512_vm10 = vcmp.eq.s32.totalorder %v2060_v31, 6  ;;  %v487_v48 = vsel %vm481_vm9, %v485_v37, %v479_v45  ;;  %v882_v28 = vld [vmem:[%s397_s9] sm:$0xff]  ;;  %s2093_s9 = scalar_lea.vmem [#allocation13], %s2036_s25  ;;  %p1736_p5 = scmp.ne.s32.totalorder %s1734_s14, %s1735_s30 }
  0x58   : > { %667 = vmatpush.xpose.msrb.mxu1 %v542_v7  ;;  %819 = vmatpush.xpose.msra.mxu3 %v694_v8  ;;  %v510_v46 = vsel %vm504_vm8, %v509_v44, %v502_v43  ;;  %v517_v47 = vstv %s516_s10  ;;  %vm489_vm11 = vcmp.eq.s32.totalorder %v2064_v35, 3  ;;  %vm497_vm12 = vcmp.eq.s32.totalorder %v2064_v35, 4  ;;  %s1225_s17 = sshll.u32 %s2093_s9, 4  ;;  %s1739_s2 = scalar_lea.hbm %s2172_s6, 64  ;;  %s1226_s17 = int_to_ptr.vmem [resolvable:$true] %s1225_s17 }
  0x59   : > { %748 = vmatpush.xpose.msra.mxu0 %v721_v13  ;;  %701 = vmatmul.f32.vlgmr.msrb.gmra.mxu2 %v700_v29  ;;  %v518_v49 = vsel %vm512_vm10, %v517_v47, %v510_v46  ;;  %v495_v50 = vsel %vm489_vm11, %v493_v39, %v487_v48  ;;  %vm505_vm13 = vcmp.eq.s32.totalorder %v2064_v35, 5  ;;  %vm513_vm14 = vcmp.eq.s32.totalorder %v2064_v35, 6  ;;  %p1737_p6 = pnand %p1736_p5, %p1980_p13  ;;  %p1740_p8 = scmp.lt.s32.totalorder %s1734_s14, %s2172_s6 }
  0x5a   : > { %v503_v55 = vsel %vm497_vm12, %v501_v41, %v495_v50  ;;  %vm825_vm15 = vcmp.eq.s32.totalorder %v2060_v31, 4294967294  ;;  %vm829_vm1 = vcmask 64512   ;;  %vm826_vm2 = vcmp.eq.s32.totalorder %v2064_v35, 4294967294  ;;  %p1741_p9 = scmp.lt.s32.totalorder %s1739_s2, %s1735_s30 }
  0x5b   : > { %727 = vmatmul.f32.vlgmr.msrb.gmra.mxu3 %v696_v15  ;;  %v511_v58 = vsel %vm505_vm13, %v509_v44, %v503_v55  ;;  %v902_v29 = vand.u32 4294901760, %v882_v28  ;;  %v1051_v35 = vand.u32 4294901760, %v883_v34  ;;  %p1738_p7 = pneg %p1737_p6 }
  0x5c   : > { %771 = vmatpush.xpose.msra.mxu1 %v694_v8  ;;  %v519_v61 = vsel %vm513_vm14, %v517_v47, %v511_v58  ;;  %p1742_p10 = por %p1741_p9, %p1740_p8 }
  0x5d   : > { %v929_v30 = vsub.f32 %v882_v28, %v902_v29  ;;  %979 = vmatpush.msrb.mxu3 %v902_v29  ;;  %v1078_v36 = vsub.f32 %v883_v34, %v1051_v35 }
  0x5e   : > { %p1743_p11 = pnand %p1742_p10, %p1738_p7 }
  0x5f   : > { %647 = vmatmul.f32.vlgmr.msrb.gmra.mxu0 %v544_v12  ;;  %669 = vmatmul.f32.vlgmr.msrb.gmra.mxu1 %v544_v12  ;;  %v930_v31 = vand.u32 4294901760, %v929_v30  ;;  %v1079_v37 = vand.u32 4294901760, %v1078_v36 }
  0x60   : > { %903 = vmatpush.msrb.mxu0 %v902_v29  ;;  %956 = vmatpush.msrb.mxu2 %v929_v30 }
  0x61   : > { %799 = vmatmul.f32.vlgmr.msra.gmra.mxu2 %v696_v15  ;;  %v931_v32 = vsub.f32 %v929_v30, %v930_v31  ;;  %v1080_v38 = vsub.f32 %v1078_v36, %v1079_v37 }
  0x62   : > { %1052 = vmatpush.msra.mxu2 %v1051_v35 }
  0x63   : > { %821 = vmatmul.f32.vlgmr.msra.gmra.mxu3 %v696_v15  ;;  %v932_v33 = vand.u32 4294901760, %v931_v32  ;;  %v1081_v40 = vand.u32 4294901760, %v1080_v38 }
  0x65   : > { %933 = vmatpush.msrb.mxu1 %v932_v33  ;;  %1082 = vmatpush.msra.mxu3 %v1081_v40 }
  0x67   : > { %751 = vmatmul.f32.vlgmr.msra.gmra.mxu0 %v697_v19  ;;  %775 = vmatmul.f32.vlgmr.msra.gmra.mxu1 %v698_v23 }
  0x68   : > { %1005 = vmatpush.msra.mxu0 %v930_v31  ;;  %1027 = vmatpush.msra.mxu1 %v902_v29 }
  0xd4   : > { %v550_v51 = vpop.f32.mrf.mxu0  ;;  %v576_v53 = vpop.f32.mrf.mxu1 }
  0xd5   : > { %v551_v52 = vadd.f32 %v550_v51, %v518_v49  ;;  %v600_v54 = vpop.f32.mrf.mxu2 }
  0xd6   : > { %v624_v56 = vpop.f32.mrf.mxu3 }
  0xd7   : > { %v577_v57 = vadd.f32 %v576_v53, %v551_v52 }
  0xd9   : > { %v601_v59 = vadd.f32 %v600_v54, %v577_v57 }
  0xdb   : > { %v625_v60 = vadd.f32 %v624_v56, %v601_v59 }
  0xdc   : > { %v648_v62 = vpop.f32.mrf.mxu0  ;;  %v670_v0 = vpop.f32.mrf.mxu1 }
  0xdd   : > { %v649_v63 = vadd.f32 %v648_v62, %v625_v60  ;;  %v702_v1 = vpop.f32.mrf.mxu2 }
  0xde   : > { %v703_v2 = vadd.f32 %v702_v1, %v519_v61  ;;  %v728_v3 = vpop.f32.mrf.mxu3 }
  0xdf   : > { %v671_v4 = vadd.f32 %v670_v0, %v649_v63 }
  0xe0   : > { %v729_v5 = vadd.f32 %v728_v3, %v703_v2 }
  0xe1   : > { %v827_v6 = vsel %vm825_vm15, -1e+30, %v671_v4 }
  0xe2   : > { %v830_v7 = vsel %vm829_vm1, %v827_v6, -inf }
  0xe3   : > { %831 = vmax.xlane.f32.xlu0 %v830_v7 }
  0xe4   : > { %v752_v8 = vpop.f32.mrf.mxu0  ;;  %v776_v10 = vpop.f32.mrf.mxu1 }
  0xe5   : > { %v753_v9 = vadd.f32 %v752_v8, %v729_v5  ;;  %v800_v11 = vpop.f32.mrf.mxu2 }
  0xe6   : > { %v822_v13 = vpop.f32.mrf.mxu3 }
  0xe7   : > { %v777_v12 = vadd.f32 %v776_v10, %v753_v9 }
  0xe9   : > { %v801_v14 = vadd.f32 %v800_v11, %v777_v12 }
  0xeb   : > { %v823_v15 = vadd.f32 %v822_v13, %v801_v14 }
  0xed   : > { %v828_v16 = vsel %vm826_vm2, -1e+30, %v823_v15 }
  0xee   : > { %v833_v17 = vsel %vm829_vm1, %v828_v16, -inf }
  0xef   : > { %834 = vmax.xlane.f32.xlu0 %v833_v17 }
 0x156   : > { %v832_v18 = vpop.xlane.xlu0 %831 }
 0x157   : > { %v836_v19 = vsub.f32 %v827_v6, %v832_v18 }
 0x159   : > { %v838_v20 = vmul.f32 1.442695, %v836_v19 }
 0x15b   : > { %1576 = vpow2.f32 %v838_v20 }
 0x161   : > { %v1577_v21 = vpop.eup %1576 }
 0x162   : > { %v835_v22 = vpop.xlane.xlu0 %834  ;;  %v842_v23 = vsel %vm829_vm1, %v1577_v21, 0.0 }
 0x163   : > { %v837_v24 = vsub.f32 %v828_v16, %v835_v22  ;;  %843 = vadd.xlane.f32.xlu1 %v842_v23 }
 0x165   : > { %v840_v25 = vmul.f32 1.442695, %v837_v24 }
 0x167   : > { %1578 = vpow2.f32 %v840_v25 }
 0x16d   : > { %v2083_v26 = vpop.eup %1578 }
 0x16e   : > { %v845_v27 = vsel %vm829_vm1, %v2083_v26, 0.0 }
 0x16f   : > { %846 = vadd.xlane.f32.xlu1 %v845_v27 }
 0x1d6   : > { %v844_v39 = vpop.xlane.xlu1 %843 }
 0x1d7   : > { %1580 = vrcp.f32 %v844_v39  ;;  %v859_v44 = vand.u32 2147483648, %v844_v39  ;;  %v857_v46 = vand.u32 2147483647, %v844_v39  ;;  %vm853_vm4 = vweird.f32 %v844_v39 }
 0x1d9   : > { %v860_v49 = vor.u32 1.1754944e-38, %v859_v44  ;;  %vm858_vm6 = vcmp.eq.f32.partialorder %v857_v46, 8.507059e+37 }
 0x1dd   : > { %v1581_v41 = vpop.eup %1580 }
 0x1de   : > { %v849_v42 = vmul.f32 %v1581_v41, %v844_v39  ;;  %vm854_vm3 = vweird.f32 %v1581_v41 }
 0x1df   : > { %vm855_vm5 = vmor %vm853_vm4, %vm854_vm3 }
 0x1e0   : > { %v850_v43 = vsub.f32 1.0, %v849_v42 }
 0x1e2   : > { %v851_v45 = vmul.f32 %v1581_v41, %v850_v43  ;;  %v847_v47 = vpop.xlane.xlu1 %846 }
 0x1e3   : > { %1582 = vrcp.f32 %v847_v47  ;;  %v874_v58 = vand.u32 2147483648, %v847_v47  ;;  %v872_v61 = vand.u32 2147483647, %v847_v47  ;;  %vm868_vm8 = vweird.f32 %v847_v47 }
 0x1e4   : > { %v852_v48 = vadd.f32 %v1581_v41, %v851_v45 }
 0x1e5   : > { %v875_v0 = vor.u32 1.1754944e-38, %v874_v58  ;;  %vm873_vm10 = vcmp.eq.f32.partialorder %v872_v61, 8.507059e+37 }
 0x1e6   : > { %v856_v50 = vsel %vm855_vm5, %v1581_v41, %v852_v48 }
 0x1e7   : > { %v861_v51 = vsel %vm858_vm6, %v860_v49, %v856_v50 }
 0x1e8   : > { %v878_v52 = vmul.f32 %v1577_v21, %v861_v51 }
 0x1e9   : > { %v1583_v53 = vpop.eup %1582 }
 0x1ea   : > { %v864_v54 = vmul.f32 %v1583_v53, %v847_v47  ;;  %v885_v55 = vsel %vm829_vm1, %v878_v52, 0  ;;  %880 = vst.msk [vmem:[%s2093_s9] sm:$0xff] %vm829_vm1, %v878_v52  ;;  %vm869_vm7 = vweird.f32 %v1583_v53 }
 0x1eb   : > { %v904_v56 = vand.u32 4294901760, %v885_v55  ;;  %vm870_vm9 = vmor %vm868_vm8, %vm869_vm7 }
 0x1ec   : > { %v865_v57 = vsub.f32 1.0, %v864_v54 }
 0x1ed   : > { %935 = vmatmul.f32.vlgmr.msrb.gmra.mxu1 %v904_v56  ;;  %v905_v59 = vsub.f32 %v885_v55, %v904_v56 }
 0x1ee   : > { %v866_v60 = vmul.f32 %v1583_v53, %v865_v57  ;;  %1128 = vmatpush.msrb.mxu1 %v1051_v35 }
 0x1ef   : > { %959 = vmatmul.f32.vlgmr.msrb.gmra.mxu2 %v905_v59  ;;  %v906_v62 = vand.u32 4294901760, %v905_v59 }
 0x1f0   : > { %v867_v63 = vadd.f32 %v1583_v53, %v866_v60  ;;  %1154 = vmatpush.msrb.mxu2 %v1079_v37 }
 0x1f1   : > { %983 = vmatmul.f32.vlgmr.msrb.gmra.mxu3 %v906_v62  ;;  %v907_v1 = vsub.f32 %v905_v59, %v906_v62 }
 0x1f2   : > { %v871_v2 = vsel %vm870_vm9, %v1583_v53, %v867_v63  ;;  %1176 = vmatpush.msrb.mxu3 %v1051_v35 }
 0x1f3   : > { %v876_v3 = vsel %vm873_vm10, %v875_v0, %v871_v2  ;;  %v908_v4 = vand.u32 4294901760, %v907_v1 }
 0x1f4   : > { %v879_v5 = vmul.f32 %v2083_v26, %v876_v3 }
 0x1f5   : > { %909 = vmatmul.f32.vlgmr.msrb.gmra.mxu0 %v908_v4  ;;  %1029 = vmatmul.f32.vlgmr.msra.gmra.mxu1 %v904_v56 }
 0x1f6   : > { %v1034_v6 = vsel %vm829_vm1, %v879_v5, 0  ;;  %1105 = vmatpush.msrb.mxu0 %v1078_v36  ;;  %881 = vst.msk [vmem:[%s2093_s9 + $0x8] sm:$0xff] %vm829_vm1, %v879_v5 }
 0x1f7   : > { %v1053_v7 = vand.u32 4294901760, %v1034_v6 }
 0x1f9   : > { %v1054_v8 = vsub.f32 %v1034_v6, %v1053_v7  ;;  %1084 = vmatmul.f32.vlgmr.msra.gmra.mxu3 %v1053_v7 }
 0x1fb   : > { %v1055_v9 = vand.u32 4294901760, %v1054_v8 }
 0x1fd   : > { %1007 = vmatmul.f32.vlgmr.msra.gmra.mxu0 %v904_v56  ;;  %1132 = vmatmul.f32.vlgmr.msrb.gmra.mxu1 %v1055_v9  ;;  %v1056_v10 = vsub.f32 %v1054_v8, %v1055_v9 }
 0x1ff   : > { %v1057_v11 = vand.u32 4294901760, %v1056_v10 }
 0x201   : > { %1058 = vmatmul.f32.vlgmr.msra.gmra.mxu2 %v1057_v11  ;;  %1178 = vmatmul.f32.vlgmr.msrb.gmra.mxu3 %v1053_v7 }
 0x205   : > { %1108 = vmatmul.f32.vlgmr.msrb.gmra.mxu0 %v1054_v8 }
 0x209   : > { %1156 = vmatmul.f32.vlgmr.msrb.gmra.mxu2 %v1053_v7 }
 0x20a   : > { %1746 = shalt.err (!%p1743_p11)
}
 0x20b   : > { %s1853_s27 = smov 128   ;;  %s1854_s21 = smov 8  }
 0x20c   : > { %1487 = dma.vmem_to_hbm [thread:$0]  (%p1980_p13), %s1226_s17, 256, %s1228_s19, %s1190_s29, %s1853_s27, %s1853_s27, %s1854_s21  }
 0x20d   : > { %s440_s26 = scalar_lea.vmem [#allocation12], %s2036_s25  ;;  %s1204_s10 = scalar_lea.hbm %s2171_s5, %s1466_s18 }
 0x20e   : > { %s1205_s9 = sshll.u32 %s440_s26, 4  ;;  %s1207_s28 = sshll.u32 %s1204_s10, 4  ;;  %s1206_s9 = int_to_ptr.vmem [resolvable:$true] %s1205_s9  ;;  %s1208_s28 = int_to_ptr.hbm [resolvable:$true] %s1207_s28 }
 0x20f   : > { %s1185_s25 = scalar_lea.sflag [#allocation4], %s2033_s4  ;;  %s1761_s11 = sshra.s32 %s1208_s28, 4  ;;  %s1762_s11 = int_to_ptr.hbm [resolvable:$true] %s1761_s11 }
 0x210   : > { %s1763_s24 = scalar_lea.hbm %s1762_s11, 16  ;;  %s1767_s17 = scalar_lea.hbm %s2171_s5, 64 }
 0x211   : > { %p1764_p12 = scmp.ne.s32.totalorder %s1762_s11, %s1763_s24  ;;  %p1768_p1 = scmp.lt.s32.totalorder %s1762_s11, %s2171_s5 }
 0x212   : > { %p1769_p4 = scmp.lt.s32.totalorder %s1767_s17, %s1763_s24 }
 0x213   : > { %p1765_p2 = pnand %p1764_p12, %p1980_p13 }
 0x214   : > { %p1770_p5 = por %p1769_p4, %p1768_p1 }
 0x215   : > { %p1766_p3 = pneg %p1765_p2 }
 0x217   : > { %p1771_p6 = pnand %p1770_p5, %p1766_p3 }
 0x26a   : > { %v936_v12 = vpop.f32.mrf.mxu1 }
 0x272   : > { %v910_v13 = vpop.f32.mrf.mxu0  ;;  %v960_v15 = vpop.f32.mrf.mxu2 }
 0x273   : > { %v937_v14 = vadd.f32 %v936_v12, %v910_v13  ;;  %v1030_v21 = vpop.f32.mrf.mxu1 }
 0x274   : > { %v984_v17 = vpop.f32.mrf.mxu3 }
 0x275   : > { %v961_v16 = vadd.f32 %v960_v15, %v937_v14 }
 0x277   : > { %v985_v18 = vadd.f32 %v984_v17, %v961_v16 }
 0x27a   : > { %v1008_v19 = vpop.f32.mrf.mxu0 }
 0x27b   : > { %v1009_v20 = vadd.f32 %v1008_v19, %v985_v18  ;;  %v1133_v28 = vpop.f32.mrf.mxu1 }
 0x27c   : > { %v1085_v23 = vpop.f32.mrf.mxu3 }
 0x27d   : > { %v1031_v22 = vadd.f32 %v1030_v21, %v1009_v20 }
 0x27f   : > { %1182 = vst.msk [vmem:[%s440_s26] sm:$0xff] %vm520_vm0, %v1031_v22 }
 0x282   : > { %v1109_v26 = vpop.f32.mrf.mxu0 }
 0x284   : > { %v1059_v24 = vpop.f32.mrf.mxu2  ;;  %v1179_v32 = vpop.f32.mrf.mxu3 }
 0x285   : > { %v1086_v25 = vadd.f32 %v1085_v23, %v1059_v24 }
 0x287   : > { %v1110_v27 = vadd.f32 %v1109_v26, %v1086_v25 }
 0x289   : > { %v1134_v29 = vadd.f32 %v1133_v28, %v1110_v27 }
 0x28c   : > { %v1157_v30 = vpop.f32.mrf.mxu2 }
 0x28d   : > { %v1158_v31 = vadd.f32 %v1157_v30, %v1134_v29 }
 0x28f   : > { %v1180_v33 = vadd.f32 %v1179_v32, %v1158_v31 }
 0x291   : > { %1183 = vst.msk [vmem:[%s440_s26 + $0x8] sm:$0xff] %vm520_vm0, %v1180_v33 }
 0x292   : > { %1774 = shalt.err (!%p1771_p6)
}
 0x293   : > { %1486 = dma.vmem_to_hbm [thread:$0]  (%p1980_p13), %s1206_s9, 256, %s1208_s28, %s1185_s25, %s1853_s27, %s1853_s27, %s1854_s21  }
 0x294 PF: > { %s2204_s4 = sld [smem:[#allocation23_spill]] }
 0x295   : > { %s2205_s14 = sld [smem:[#allocation21_spill]] }
 0x29a   : > { %p1519_p7 = scmp.ge.s32.totalorder %s2204_s4, 2 }
 0x29b   : > { %s1242_s16 = sand.u32 1, %s2205_s14  }
 0x29c   : > { %p1508_p8 = pnand %p1519_p7, %p1984_p0  ;;  %s1243_s0 = scalar_lea.sflag [#allocation4], %s1242_s16 }
 0x29e   : > { %p1509_p9 = pneg %p1508_p8 }
 0x2a0   : > { %1816 = dma.done.wait (%p1509_p9), %s1243_s0, 256  }
 0x2a1   : > { %1818 = vsyncadd (%p1509_p9), %s1243_s0, 4294967040  ;;  %s1253_s2 = scalar_lea.sflag [#allocation14], %s1242_s16 }
 0x2a2   : > { %1820 = dma.done.wait (%p1509_p9), %s1253_s2, 256  }
 0x2a3   : > { %1822 = vsyncadd (%p1509_p9), %s1253_s2, 4294967040  ;;  %s31_s26 = sadd.s32 1, %s2204_s4   ;;  %s2207_s12 = sld [smem:[#allocation25_spill]] }
 0x2a4   : > { %p28_p10 = scmp.ge.s32.totalorder %s31_s26, 6   ;;  %s2208_s24 = sld [smem:[#allocation22_spill]] }
 0x2a5   : > { %s2209_s25 = sld [smem:[#allocation24_spill]]  ;;  %s2210_s21 = smov %s1829_s22 }
 0x2a6   : > { %s2211_s22 = smov %s1833_s23  ;;  %30 = sbr.rel (!%p28_p10) target bundleno = 16 (0x10), region = 136 }
 0x2a9   : > { %s2212_s23 = smov %s2207_s12 }
 0x2ab   :  { %1259 = vsyncpa [#allocation3], 1 }
 0x2ac   :  { %1261 = vsyncpa [#allocation3 + $0x1], 1 }
 0x2ad   :  { %1262 = vsyncpa [#allocation8], 1 }
 0x2ae   :  { %1264 = vsyncpa [#allocation8 + $0x1], 1 }
 0x2af   :  { %1265 = vsyncpa [#allocation11], 1 }
 0x2b0   :  { %1266 = vsyncpa [#allocation4], 1 }
 0x2b1   :  { %1268 = vsyncpa [#allocation4 + $0x1], 1 }
 0x2b2   :  { %1269 = vsyncpa [#allocation14], 1 }
 0x2b3   :  { %1271 = vsyncpa [#allocation14 + $0x1], 1 }
 0x2b4   :  { %1272 = vsyncpa [#allocation5], 1 }
 0x2b5   :  { %1274 = vsyncpa [#allocation5 + $0x1], 1 }

</bundles_post_ra>
